<compile_context>
chip_gen: v7x
topology: tpu7x:2x2x1
jax: 0.10.0
libtpu: 0.0.40
codegen_flags: <defaults>
</compile_context>

<pallas_src>
import jax
import jax.numpy as jnp
from jax.experimental import pallas as pl
from jax.experimental.pallas import tpu as pltpu

EPS = 1e-5
LANE = 128


def _round_up(n, m):
    return ((n + m - 1) // m) * m


def batch_net_kernel(x_ref, w1t_ref, w2t_ref, w3t_ref, vec_ref, o_ref):
    """Fused 3-layer MLP with training-mode BatchNorm on layers 1 & 2.

    x_ref   : (B, in_dim)        f32 (unpadded; full-array block)
    w1t_ref : (in_dim, h1)       bf16, pre-transposed
    w2t_ref : (h1, h2)           bf16, pre-transposed
    w3t_ref : (h2, out_p)        bf16, pre-transposed, N padded to 128
    vec_ref : (8, dmax)          f32, rows = [g1, be1, g2, be2, b3, 0, 0, 0]
    o_ref   : (B, out_p)         f32 (lane-dense padded; pad lanes are zero)
    """
    inv_b = jnp.float32(1.0 / x_ref.shape[0])
    d1 = w1t_ref.shape[1]
    d2 = w2t_ref.shape[1]
    d3 = w3t_ref.shape[1]
    vec = vec_ref[...]

    def linear(h, wt_ref):
        # bf16 x bf16 on the MXU, f32 accumulation.  No bias: layers 1-2 feed
        # straight into training-mode BN, which cancels a bias exactly.
        return jnp.dot(h.astype(jnp.bfloat16), wt_ref[...],
                       preferred_element_type=jnp.float32)

    def bn_relu(y, gamma, beta):
        # One-pass biased batch statistics (PyTorch training-mode BN).
        s1 = jnp.sum(y, axis=0, keepdims=True)
        s2 = jnp.sum(y * y, axis=0, keepdims=True)
        mean = s1 * inv_b
        # Clamp: E[y^2] - mean^2 can go slightly negative from f32 cancellation.
        var = jnp.maximum(s2 * inv_b - mean * mean, 0.0)
        # Fold BN into a per-feature scale/shift: 2 VPU ops/element instead of 4.
        scale = gamma * jax.lax.rsqrt(var + EPS)
        shift = beta - mean * scale
        return jnp.maximum(y * scale + shift, 0.0)

    h = bn_relu(linear(x_ref[...], w1t_ref), vec[0:1, :d1], vec[1:2, :d1])
    h = bn_relu(linear(h, w2t_ref), vec[2:3, :d2], vec[3:4, :d2])
    o_ref[...] = (linear(h, w3t_ref) + vec[4:5, :d3]).astype(o_ref.dtype)


def prepare_params(p, weight_dtype=jnp.bfloat16):
    """One-time layout/dtype prep: transpose + bf16 weights, pad ONLY the final
    output N dim to 128 (lane-dense vst), pack g1/be1/g2/be2/b3 into one
    (8, dmax) f32 operand.  b1/b2 are dropped (BN cancels them exactly)."""
    h1, in_dim = p["w1"].shape
    h2 = p["w2"].shape[0]
    out_dim = p["w3"].shape[0]
    out_p = _round_up(out_dim, LANE)

    w1t = p["w1"].T.astype(weight_dtype)                       # (in_dim, h1)
    w2t = p["w2"].T.astype(weight_dtype)                       # (h1,    h2)
    w3t = (jnp.zeros((h2, out_p), jnp.float32)
           .at[:, :out_dim].set(p["w3"].T)
           .astype(weight_dtype))                              # (h2, out_p)

    dmax = _round_up(max(h1, h2, out_p), LANE)
    vec = jnp.zeros((8, dmax), jnp.float32)
    vec = vec.at[0, :h1].set(p["g1"])
    vec = vec.at[1, :h1].set(p["be1"])
    vec = vec.at[2, :h2].set(p["g2"])
    vec = vec.at[3, :h2].set(p["be2"])
    vec = vec.at[4, :out_dim].set(p["b3"])

    return {"w1t": w1t, "w2t": w2t, "w3t": w3t, "vec": vec,
            "in_dim": in_dim, "out_dim": out_dim}


def batch_net_forward(x, prep):
    """x: (B, in_dim) float32; prep: output of prepare_params (built once).

    Returns the lane-dense padded output (B, out_p); columns [:out_dim] hold
    the answer, pad lanes are exactly zero.  Slice at the consumer — no
    per-call un-pad copy here.
    """
    # BN statistics are over the full batch -> single block over B (no grid).
    # TODO(synk): at B >= ~128 (v5e) / ~256 (v6e/v7x) rows per matmul, switch
    #             to the gridded/pipelined version described at the top.
    B = x.shape[0]
    dout_p = prep["w3t"].shape[1]

    vmem = pl.BlockSpec(memory_space=pltpu.MemorySpace.VMEM)
    return pl.pallas_call(
        batch_net_kernel,
        out_shape=jax.ShapeDtypeStruct((B, dout_p), jnp.float32),
        in_specs=[vmem] * 5,
        out_specs=vmem,
    )(x, prep["w1t"], prep["w2t"], prep["w3t"], prep["vec"])


def init_params(key, in_dim, h1, h2, out_dim):
    ks = jax.random.split(key, 6)
    return {
        # Linear layers: PyTorch layout (out_features, in_features)
        "w1": jax.random.normal(ks[0], (h1, in_dim), jnp.float32) * 0.1,
        "b1": jax.random.normal(ks[1], (h1,), jnp.float32) * 0.1,
        "w2": jax.random.normal(ks[2], (h2, h1), jnp.float32) * 0.1,
        "b2": jax.random.normal(ks[3], (h2,), jnp.float32) * 0.1,
        "w3": jax.random.normal(ks[4], (out_dim, h2), jnp.float32) * 0.1,
        "b3": jax.random.normal(ks[5], (out_dim,), jnp.float32) * 0.1,
        # BatchNorm1d affine params: PyTorch default init (gamma=1, beta=0)
        "g1": jnp.ones((h1,), jnp.float32),
        "be1": jnp.zeros((h1,), jnp.float32),
        "g2": jnp.ones((h2,), jnp.float32),
        "be2": jnp.zeros((h2,), jnp.float32),
    }


def reference_forward(x, p, matmul_dtype=jnp.float32):
    """Pure-JAX replica of the PyTorch training-mode forward (biases included —
    BN cancels b1/b2 exactly, so the kernel's bias-free layers 1-2 must match).
    matmul_dtype=jnp.bfloat16 mirrors the kernel's MXU input quantization."""
    def dot(a, b):
        return jnp.dot(a.astype(matmul_dtype), b.astype(matmul_dtype),
                       preferred_element_type=jnp.float32)

    def block(h, w, b, g, be):
        y = dot(h, w.T) + b
        m = y.mean(axis=0, keepdims=True)
        v = ((y - m) ** 2).mean(axis=0, keepdims=True)
        return jnp.maximum((y - m) * jax.lax.rsqrt(v + EPS) * g + be, 0.0)

    h = block(x, p["w1"], p["b1"], p["g1"], p["be1"])
    h = block(h, p["w2"], p["b2"], p["g2"], p["be2"])
    return dot(h, p["w3"].T) + p["b3"]


if __name__ == "__main__":
    key = jax.random.PRNGKey(0)
    kx, kp = jax.random.split(key)

    B, in_dim, n_hidden_1, n_hidden_2, out_dim = 8, 32, 64, 64, 16
    x = jax.random.normal(kx, (B, in_dim), jnp.float32)
    params = init_params(kp, in_dim, n_hidden_1, n_hidden_2, out_dim)

    prep = prepare_params(params)  # one-time layout/dtype prep (no per-call .T)

    out_pad = jax.block_until_ready(batch_net_forward(x, prep))
    assert out_pad.shape == (B, _round_up(out_dim, LANE))

    # Consumer-side view of the real output; pad lanes must be exactly zero.
    out = out_pad[:, :out_dim]
    assert jnp.all(out_pad[:, out_dim:] == 0.0), "pad lanes not zero"

    # Tight check vs a reference using the same bf16 matmul-input quantization.
    ref_bf16 = reference_forward(x, params, matmul_dtype=jnp.bfloat16)
    assert jnp.allclose(out, ref_bf16, atol=5e-3, rtol=5e-3), \
        "mismatch vs bf16-matched reference"

    # Sanity check vs the pure-f32 PyTorch-style reference (tolerance bounds the
    # bf16 weight/activation quantization error).
    ref_f32 = reference_forward(x, params, matmul_dtype=jnp.float32)
    assert jnp.allclose(out, ref_f32, atol=5e-2, rtol=5e-2), \
        "mismatch vs f32 reference"

    print("KERNEL_OK")
</pallas_src>

<mosaic_0001>
module attributes {stable_mosaic.version = 11 : i64} {
  func.func @batch_net_kernel(%arg0: memref<8x32xf32, #tpu.memory_space<vmem>>, %arg1: memref<32x64xbf16, #tpu.memory_space<vmem>>, %arg2: memref<64x64xbf16, #tpu.memory_space<vmem>>, %arg3: memref<64x128xbf16, #tpu.memory_space<vmem>>, %arg4: memref<8x128xf32, #tpu.memory_space<vmem>>, %arg5: memref<8x128xf32, #tpu.memory_space<vmem>>) attributes {dimension_semantics = [], scalar_prefetch = 0 : i64, scratch_operands = 0 : i64, tpu.core_type = #tpu.core_type<tc>} {
    %c0 = arith.constant 0 : index
    %c0_0 = arith.constant 0 : index
    %0 = vector.load %arg4[%c0, %c0_0] : memref<8x128xf32, #tpu.memory_space<vmem>>, vector<8x128xf32>
    %c0_1 = arith.constant 0 : index
    %c0_2 = arith.constant 0 : index
    %1 = vector.load %arg0[%c0_1, %c0_2] : memref<8x32xf32, #tpu.memory_space<vmem>>, vector<8x32xf32>
    %2 = arith.truncf %1 : vector<8x32xf32> to vector<8x32xbf16>
    %c0_3 = arith.constant 0 : index
    %c0_4 = arith.constant 0 : index
    %3 = vector.load %arg1[%c0_3, %c0_4] : memref<32x64xbf16, #tpu.memory_space<vmem>>, vector<32x64xbf16>
    %cst = arith.constant dense<0.000000e+00> : vector<8x64xf32>
    %4 = tpu.matmul %2, %3, %cst {dimension_numbers = #tpu.dot_dimension_numbers<[1], [0], [0], [1], [0, 0, 1, 1], [], []>} : vector<8x32xbf16>, vector<32x64xbf16>, vector<8x64xf32> -> vector<8x64xf32>
    %5 = vector.extract_strided_slice %0 {offsets = [0, 0], sizes = [1, 64], strides = [1, 1]} : vector<8x128xf32> to vector<1x64xf32>
    %6 = vector.extract_strided_slice %0 {offsets = [1, 0], sizes = [1, 64], strides = [1, 1]} : vector<8x128xf32> to vector<1x64xf32>
    %cst_5 = arith.constant dense<0.000000e+00> : vector<64xf32>
    %7 = vector.multi_reduction <add>, %4, %cst_5 [0] : vector<8x64xf32> to vector<64xf32>
    %8 = vector.shape_cast %7 : vector<64xf32> to vector<1x64xf32>
    %9 = arith.mulf %4, %4 : vector<8x64xf32>
    %cst_6 = arith.constant dense<0.000000e+00> : vector<64xf32>
    %10 = vector.multi_reduction <add>, %9, %cst_6 [0] : vector<8x64xf32> to vector<64xf32>
    %11 = vector.shape_cast %10 : vector<64xf32> to vector<1x64xf32>
    %cst_7 = arith.constant 1.250000e-01 : f32
    %12 = vector.broadcast %cst_7 : f32 to vector<1x64xf32>
    %13 = arith.mulf %8, %12 : vector<1x64xf32>
    %cst_8 = arith.constant 1.250000e-01 : f32
    %14 = vector.broadcast %cst_8 : f32 to vector<1x64xf32>
    %15 = arith.mulf %11, %14 : vector<1x64xf32>
    %16 = arith.mulf %13, %13 : vector<1x64xf32>
    %17 = arith.subf %15, %16 : vector<1x64xf32>
    %cst_9 = arith.constant 0.000000e+00 : f32
    %18 = vector.broadcast %cst_9 : f32 to vector<1x64xf32>
    %19 = arith.maximumf %17, %18 : vector<1x64xf32>
    %cst_10 = arith.constant 9.99999974E-6 : f32
    %20 = vector.broadcast %cst_10 : f32 to vector<1x64xf32>
    %21 = arith.addf %19, %20 : vector<1x64xf32>
    %22 = math.rsqrt %21 : vector<1x64xf32>
    %23 = arith.mulf %5, %22 : vector<1x64xf32>
    %24 = arith.mulf %13, %23 : vector<1x64xf32>
    %25 = arith.subf %6, %24 : vector<1x64xf32>
    %26 = vector.broadcast %23 : vector<1x64xf32> to vector<8x64xf32>
    %27 = arith.mulf %4, %26 : vector<8x64xf32>
    %28 = vector.broadcast %25 : vector<1x64xf32> to vector<8x64xf32>
    %29 = arith.addf %27, %28 : vector<8x64xf32>
    %cst_11 = arith.constant 0.000000e+00 : f32
    %30 = vector.broadcast %cst_11 : f32 to vector<8x64xf32>
    %31 = arith.maximumf %29, %30 : vector<8x64xf32>
    %32 = arith.truncf %31 : vector<8x64xf32> to vector<8x64xbf16>
    %c0_12 = arith.constant 0 : index
    %c0_13 = arith.constant 0 : index
    %33 = vector.load %arg2[%c0_12, %c0_13] : memref<64x64xbf16, #tpu.memory_space<vmem>>, vector<64x64xbf16>
    %cst_14 = arith.constant dense<0.000000e+00> : vector<8x64xf32>
    %34 = tpu.matmul %32, %33, %cst_14 {dimension_numbers = #tpu.dot_dimension_numbers<[1], [0], [0], [1], [0, 0, 1, 1], [], []>} : vector<8x64xbf16>, vector<64x64xbf16>, vector<8x64xf32> -> vector<8x64xf32>
    %35 = vector.extract_strided_slice %0 {offsets = [2, 0], sizes = [1, 64], strides = [1, 1]} : vector<8x128xf32> to vector<1x64xf32>
    %36 = vector.extract_strided_slice %0 {offsets = [3, 0], sizes = [1, 64], strides = [1, 1]} : vector<8x128xf32> to vector<1x64xf32>
    %cst_15 = arith.constant dense<0.000000e+00> : vector<64xf32>
    %37 = vector.multi_reduction <add>, %34, %cst_15 [0] : vector<8x64xf32> to vector<64xf32>
    %38 = vector.shape_cast %37 : vector<64xf32> to vector<1x64xf32>
    %39 = arith.mulf %34, %34 : vector<8x64xf32>
    %cst_16 = arith.constant dense<0.000000e+00> : vector<64xf32>
    %40 = vector.multi_reduction <add>, %39, %cst_16 [0] : vector<8x64xf32> to vector<64xf32>
    %41 = vector.shape_cast %40 : vector<64xf32> to vector<1x64xf32>
    %cst_17 = arith.constant 1.250000e-01 : f32
    %42 = vector.broadcast %cst_17 : f32 to vector<1x64xf32>
    %43 = arith.mulf %38, %42 : vector<1x64xf32>
    %cst_18 = arith.constant 1.250000e-01 : f32
    %44 = vector.broadcast %cst_18 : f32 to vector<1x64xf32>
    %45 = arith.mulf %41, %44 : vector<1x64xf32>
    %46 = arith.mulf %43, %43 : vector<1x64xf32>
    %47 = arith.subf %45, %46 : vector<1x64xf32>
    %cst_19 = arith.constant 0.000000e+00 : f32
    %48 = vector.broadcast %cst_19 : f32 to vector<1x64xf32>
    %49 = arith.maximumf %47, %48 : vector<1x64xf32>
    %cst_20 = arith.constant 9.99999974E-6 : f32
    %50 = vector.broadcast %cst_20 : f32 to vector<1x64xf32>
    %51 = arith.addf %49, %50 : vector<1x64xf32>
    %52 = math.rsqrt %51 : vector<1x64xf32>
    %53 = arith.mulf %35, %52 : vector<1x64xf32>
    %54 = arith.mulf %43, %53 : vector<1x64xf32>
    %55 = arith.subf %36, %54 : vector<1x64xf32>
    %56 = vector.broadcast %53 : vector<1x64xf32> to vector<8x64xf32>
    %57 = arith.mulf %34, %56 : vector<8x64xf32>
    %58 = vector.broadcast %55 : vector<1x64xf32> to vector<8x64xf32>
    %59 = arith.addf %57, %58 : vector<8x64xf32>
    %cst_21 = arith.constant 0.000000e+00 : f32
    %60 = vector.broadcast %cst_21 : f32 to vector<8x64xf32>
    %61 = arith.maximumf %59, %60 : vector<8x64xf32>
    %62 = arith.truncf %61 : vector<8x64xf32> to vector<8x64xbf16>
    %c0_22 = arith.constant 0 : index
    %c0_23 = arith.constant 0 : index
    %63 = vector.load %arg3[%c0_22, %c0_23] : memref<64x128xbf16, #tpu.memory_space<vmem>>, vector<64x128xbf16>
    %cst_24 = arith.constant dense<0.000000e+00> : vector<8x128xf32>
    %64 = tpu.matmul %62, %63, %cst_24 {dimension_numbers = #tpu.dot_dimension_numbers<[1], [0], [0], [1], [0, 0, 1, 1], [], []>} : vector<8x64xbf16>, vector<64x128xbf16>, vector<8x128xf32> -> vector<8x128xf32>
    %65 = vector.extract_strided_slice %0 {offsets = [4, 0], sizes = [1, 128], strides = [1, 1]} : vector<8x128xf32> to vector<1x128xf32>
    %66 = vector.broadcast %65 : vector<1x128xf32> to vector<8x128xf32>
    %67 = arith.addf %64, %66 : vector<8x128xf32>
    %c0_25 = arith.constant 0 : index
    %c0_26 = arith.constant 0 : index
    %68 = vector.load %arg5[%c0_25, %c0_26] : memref<8x128xf32, #tpu.memory_space<vmem>>, vector<8x128xf32>
    tpu.vector_store %arg5[%c0_25, %c0_26], %67 {strides = array<i32>} : memref<8x128xf32, #tpu.memory_space<vmem>>, vector<8x128xf32>,
    return
  }
}

</mosaic_0001>

<bundles_post_ra>
// kernel: tpu_custom_call.1
= control target key start
LH: loop header
LB: loop body
LE: loop exit
PB: predicated region body
PF: predicated region fallthrough
CT: control target
= control target key end

     0   :  { %10 = vsyncpa [#allocation3], 0  ;;  %s734_s0 = inlined_call_operand.hbm [shape: f32[8,32], index: 0, kind: input, shape index: {}]   ;;  %s735_s1 = inlined_call_operand.hbm [shape: bf16[32,64], index: 1, kind: input, shape index: {}]   ;;  %s736_s2 = inlined_call_operand.hbm [shape: bf16[64,64], index: 2, kind: input, shape index: {}]   ;;  %s737_s3 = inlined_call_operand.hbm [shape: bf16[64,128], index: 3, kind: input, shape index: {}]   ;;  %s738_s4 = inlined_call_operand.vmem [shape: f32[8,128], index: 4, kind: input, shape index: {}]   ;;  %s739_s5 = inlined_call_operand.hbm [shape: f32[8,128], index: 5, kind: output, shape index: {}]  }
   0x1   :  { %11 = vsyncpa [#allocation6], 0 }
   0x2   :  { %12 = vsyncpa [#allocation9], 0 }
   0x3   :  { %13 = vsyncpa [#allocation4], 0  ;;  %s590_s18 = smov [#allocation5]   ;;  %s472_s22 = scalar_lea.hbm %s735_s1, 256 }
   0x4   :  { %s29_s19 = sshll.u32 %s590_s18, 4  ;;  %p473_p0 = scmp.ne.s32.totalorder %s735_s1, %s472_s22  ;;  %s30_s19 = int_to_ptr.vmem [resolvable:$true] %s29_s19 }
   0x5   :  { %p476_p1 = scmp.lt.u32.totalorder %s472_s22, %s735_s1 }
   0x7   :  { %p478_p2 = pnand %p476_p1, %p473_p0 }
   0x9   :  { %481 = shalt.err (!%p478_p2)
}
   0xa   :  { %s482_s27 = scalar_lea.vmem %s30_s19, 256  ;;  %p487_p4 = scmp.lt.s32.totalorder %s30_s19, %s30_s19 }
   0xb   :  { %p483_p3 = scmp.ne.s32.totalorder %s30_s19, %s482_s27  ;;  %p488_p5 = scmp.lt.s32.totalorder %s482_s27, %s482_s27 }
   0xd   :  { %p489_p6 = por %p488_p5, %p487_p4 }
   0xf   :  { %p490_p7 = pnand %p489_p6, %p483_p3 }
  0x11   :  { %493 = shalt.err (!%p490_p7)
}
  0x12   :  { %s591_s28 = smov 64   ;;  %s592_s29 = smov 4  }
  0x13   :  { %35 = dma.hbm_to_vmem [thread:$0]  %s735_s1, 256, %s30_s19, [#allocation6], %s591_s28, %s591_s28, %s592_s29  }
  0x14   :  { %s593_s7 = smov [#allocation2]   ;;  %s594_s9 = smov [#allocation7]  }
  0x15   :  { %s20_s8 = sshll.u32 %s593_s7, 4  ;;  %s41_s10 = sshll.u32 %s594_s9, 4  ;;  %s21_s8 = int_to_ptr.vmem [resolvable:$true] %s20_s8  ;;  %s42_s10 = int_to_ptr.vmem [resolvable:$true] %s41_s10 }
  0x16   :  { %s494_s13 = scalar_lea.hbm %s734_s0, 128 }
  0x17   :  { %p495_p8 = scmp.ne.s32.totalorder %s734_s0, %s494_s13  ;;  %p498_p9 = scmp.lt.u32.totalorder %s494_s13, %s734_s0 }
  0x19   :  { %p500_p10 = pnand %p498_p9, %p495_p8 }
  0x1b   :  { %503 = shalt.err (!%p500_p10)
}
  0x1c   :  { %s504_s1 = scalar_lea.vmem %s21_s8, 128  ;;  %p509_p12 = scmp.lt.s32.totalorder %s21_s8, %s21_s8 }
  0x1d   :  { %p505_p11 = scmp.ne.s32.totalorder %s21_s8, %s504_s1  ;;  %p510_p13 = scmp.lt.s32.totalorder %s504_s1, %s504_s1 }
  0x1f   :  { %p511_p0 = por %p510_p13, %p509_p12 }
  0x21   :  { %p512_p1 = pnand %p511_p0, %p505_p11 }
  0x23   :  { %515 = shalt.err (!%p512_p1)
}
  0x24   :  { %23 = dma.hbm_to_vmem [thread:$0]  %s734_s0, 128, %s21_s8, [#allocation3]  }
  0x25   :  { %s516_s22 = scalar_lea.hbm %s736_s2, 512 }
  0x26   :  { %p517_p2 = scmp.ne.s32.totalorder %s736_s2, %s516_s22  ;;  %p520_p3 = scmp.lt.u32.totalorder %s516_s22, %s736_s2 }
  0x28   :  { %p522_p4 = pnand %p520_p3, %p517_p2 }
  0x2a   :  { %525 = shalt.err (!%p522_p4)
}
  0x2b   :  { %s526_s27 = scalar_lea.vmem %s42_s10, 512  ;;  %p531_p6 = scmp.lt.s32.totalorder %s42_s10, %s42_s10 }
  0x2c   :  { %p527_p5 = scmp.ne.s32.totalorder %s42_s10, %s526_s27  ;;  %p532_p7 = scmp.lt.s32.totalorder %s526_s27, %s526_s27 }
  0x2e   :  { %p533_p8 = por %p532_p7, %p531_p6 }
  0x30   :  { %p534_p9 = pnand %p533_p8, %p527_p5 }
  0x32   :  { %537 = shalt.err (!%p534_p9)
}
  0x33   :  { %47 = dma.hbm_to_vmem [thread:$0]  %s736_s2, 512, %s42_s10, [#allocation6], %s591_s28, %s591_s28, %s592_s29  }
  0x34   :  { %s595_s6 = smov [#allocation8]   ;;  %s538_s11 = scalar_lea.hbm %s737_s3, 512 }
  0x35   :  { %s53_s7 = sshll.u32 %s595_s6, 4  ;;  %p539_p10 = scmp.ne.s32.totalorder %s737_s3, %s538_s11  ;;  %s54_s7 = int_to_ptr.vmem [resolvable:$true] %s53_s7 }
  0x36   :  { %p542_p11 = scmp.lt.u32.totalorder %s538_s11, %s737_s3 }
  0x38   :  { %p544_p12 = pnand %p542_p11, %p539_p10 }
  0x3a   :  { %547 = shalt.err (!%p544_p12)
}
  0x3b   :  { %s548_s16 = scalar_lea.vmem %s54_s7, 512  ;;  %p553_p0 = scmp.lt.s32.totalorder %s54_s7, %s54_s7 }
  0x3c   :  { %p549_p13 = scmp.ne.s32.totalorder %s54_s7, %s548_s16  ;;  %p554_p1 = scmp.lt.s32.totalorder %s548_s16, %s548_s16 }
  0x3e   :  { %p555_p2 = por %p554_p1, %p553_p0 }
  0x40   :  { %p556_p3 = pnand %p555_p2, %p549_p13 }
  0x42   :  { %559 = shalt.err (!%p556_p3)
}
  0x43   :  { %59 = dma.hbm_to_vmem [thread:$0]  %s737_s3, 512, %s54_s7, [#allocation9], %s591_s28, %s591_s28, %s592_s29  }
  0x44   :  { %582 = dma.done.wait [#allocation3], 128  }
  0x45   :  { %583 = vsyncadd [#allocation3], 4294967168 }
  0x46   :  { %584 = dma.done.wait [#allocation6], 768  }
  0x47   :  { %585 = vsyncadd [#allocation6], 4294966528 }
  0x48   :  { %586 = dma.done.wait [#allocation9], 512  }
  0x49   :  { %587 = vsyncadd [#allocation9], 4294966784  ;;  %v596_v0 = vmov 0.0   ;;  %vm597_vm0 = vmmov 0   ;;  %v458_v1 = vld [vmem:[#allocation5] sm:$0xff]   ;;  %v459_v2 = vld [vmem:[#allocation5 + $0x8] sm:$0xff]   ;;  %v167_v34 = vlaneseq }
  0x4a   :  { %417 = vmatprep.subr.bf16.mxu0 %v596_v0  ;;  %421 = vmatprep.mubr.msk.bf16.mxu0 %vm597_vm0, %v596_v0  ;;  %v76_v3 = vld [vmem:[#allocation2] sm:$0xff]  ;;  %vm94_vm1 = vcmask 261120   ;;  %v460_v5 = vld [vmem:[#allocation7] sm:$0xff]   ;;  %v462_v7 = vld [vmem:[#allocation7 + $0x10] sm:$0xff]   ;;  %vm138_vm2 = vcmask 523264  }
  0x4b   :  { %425 = vmatprep.subr.bf16.mxu1 %v596_v0  ;;  %433 = vmatprep.mubr.msk.bf16.mxu1 %vm597_vm0, %v596_v0  ;;  %v77_v4 = vpack.c.bf16 %v76_v3, %v76_v3  ;;  %v461_v6 = vld [vmem:[#allocation7 + $0x8] sm:$0xff]   ;;  %v463_v8 = vld [vmem:[#allocation7 + $0x18] sm:$0xff]   ;;  %v698_v35 = vshrl.u32 %v167_v34, 7  ;;  %v464_v50 = vld [vmem:[#allocation8] sm:$0xff]  }
  0x4c   :  { %418 = vmatpush3.bf16.msra.mxu0 %v458_v1  ;;  %426 = vmatpush3.bf16.msra.mxu1 %v460_v5  ;;  %v703_v36 = vld [vmem:[%s738_s4] sm:$0xff]  ;;  %v466_v52 = vld [vmem:[#allocation8 + $0x10] sm:$0xff]   ;;  %v467_v53 = vld [vmem:[#allocation8 + $0x18] sm:$0xff]   ;;  %s598_s4 = smov [#allocation10]  }
  0x4d   :  { %419 = vmatprep.subr.bf16.mxu0 %v596_v0  ;;  %427 = vmatprep.subr.bf16.mxu1 %v596_v0  ;;  %v169_v39 = vsub.s32 0, %v698_v35  ;;  %v174_v43 = vsub.s32 1, %v698_v35  ;;  %v465_v51 = vld [vmem:[#allocation8 + $0x8] sm:$0xff]   ;;  %s380_s29 = sshll.u32 %s598_s4, 4  ;;  %s381_s29 = int_to_ptr.vmem [resolvable:$true] %s380_s29 }
  0x4e   :  { %s560_s17 = scalar_lea.vmem %s381_s29, 128  ;;  %p565_p5 = scmp.lt.s32.totalorder %s381_s29, %s381_s29 }
  0x4f   :  { %p561_p4 = scmp.ne.s32.totalorder %s381_s29, %s560_s17  ;;  %p566_p6 = scmp.lt.s32.totalorder %s560_s17, %s560_s17 }
  0x50   :  { %420 = vmatpush3.bf16.msra.mxu0 %v459_v2  ;;  %428 = vmatpush3.bf16.msra.mxu1 %v461_v6 }
  0x51   :  { %437 = vmatprep.subr.bf16.mxu0 %v596_v0  ;;  %429 = vmatprep.subr.bf16.mxu1 %v596_v0  ;;  %p567_p7 = por %p566_p6, %p565_p5 }
  0x53   :  { %422 = vmatmul.mubr.msk.bf16.vlgmr.msra.gmra.mrb[0].mxu0 %vm94_vm1, %v77_v4  ;;  %p568_p8 = pnand %p567_p7, %p561_p4 }
  0x54   :  { %445 = vmatprep.mubr.msk.bf16.mxu0 %vm597_vm0, %v596_v0  ;;  %430 = vmatpush3.bf16.msra.mxu1 %v462_v7 }
  0x55   :  { %431 = vmatprep.subr.bf16.mxu1 %v596_v0  ;;  %438 = vmatpush3.bf16.msra.mxu0 %v464_v50 }
  0x56   :  { %439 = vmatprep.subr.bf16.mxu0 %v596_v0 }
  0x58   :  { %432 = vmatpush3.bf16.msra.mxu1 %v463_v8 }
  0x59   :  { %440 = vmatpush3.bf16.msra.mxu0 %v465_v51 }
  0x5a   :  { %441 = vmatprep.subr.bf16.mxu0 %v596_v0 }
  0x5d   :  { %442 = vmatpush3.bf16.msra.mxu0 %v466_v52 }
  0x5e   :  { %443 = vmatprep.subr.bf16.mxu0 %v596_v0 }
  0x61   :  { %444 = vmatpush3.bf16.msra.mxu0 %v467_v53 }
 0x126   :  { %v132_v9 = vpop.f32.mrb[0].mxu0 }
 0x127   :  { %v139_v10 = vsel %vm138_vm2, %v132_v9, 0.0  ;;  %v146_v11 = vmul.f32 %v132_v9, %v132_v9  ;;  %v423_v12 = vpop.f32.mrb[1].mxu0 }
 0x128   :  { %v140_v13 = vrot.slane %v139_v10, 4  ;;  %v135_v14 = vpop.f32.mrb[2].mxu0 }
 0x129   :  { %v147_v15 = vsel %vm138_vm2, %v146_v11, 0.0  ;;  %v424_v16 = vpop.f32.mrb[3].mxu0 }
 0x12a   :  { %v141_v17 = vadd.f32 %v140_v13, %v139_v10  ;;  %v148_v18 = vrot.slane %v147_v15, 4 }
 0x12c   :  { %v142_v19 = vrot.slane %v141_v17, 2  ;;  %v149_v20 = vadd.f32 %v148_v18, %v147_v15 }
 0x12e   :  { %v143_v21 = vadd.f32 %v142_v19, %v141_v17  ;;  %v150_v22 = vrot.slane %v149_v20, 2  ;;  %v284_v17 = vsub.s32 2, %v698_v35 }
 0x130   :  { %v144_v23 = vrot.slane %v143_v21, 1  ;;  %v151_v24 = vadd.f32 %v150_v22, %v149_v20 }
 0x132   :  { %v145_v25 = vadd.f32 %v144_v23, %v143_v21  ;;  %v152_v26 = vrot.slane %v151_v24, 1  ;;  %v289_v21 = vsub.s32 3, %v698_v35 }
 0x134   :  { %v153_v27 = vadd.f32 %v152_v26, %v151_v24  ;;  %v154_v28 = vmul.f32 0.125, %v145_v25 }
 0x136   :  { %v155_v29 = vmul.f32 0.125, %v153_v27  ;;  %v156_v30 = vmul.f32 %v154_v28, %v154_v28 }
 0x138   :  { %v157_v31 = vsub.f32 %v155_v29, %v156_v30 }
 0x13a   :  { %v158_v32 = vmax.f32 %v157_v31, 0.0 }
 0x13c   :  { %v159_v33 = vadd.f32 1e-05, %v158_v32 }
 0x13e   :  { %468 = vrsqrt.f32 %v159_v33 }
 0x148   :  { %v469_v37 = vpop.eup %468 }
 0x149   :  { %v161_v38 = vmul.f32 %v469_v37, %v703_v36 }
 0x14b   :  { %v162_v40 = vmul.f32 %v161_v38, %v154_v28  ;;  %v170_v42 = vrot.slane %v161_v38, %v169_v39  ;;  %v304_v28 = vsub.s32 4, %v698_v35 }
 0x14d   :  { %v164_v41 = vrot.slane %v162_v40, 7  ;;  %v171_v45 = vmul.f32 %v170_v42, %v132_v9  ;;  %v305_v29 = vrot.slane %v703_v36, %v304_v28 }
 0x14f   :  { %v166_v44 = vsub.f32 %v703_v36, %v164_v41 }
 0x151   :  { %v175_v46 = vrot.slane %v166_v44, %v174_v43 }
 0x153   :  { %v176_v47 = vadd.f32 %v175_v46, %v171_v45 }
 0x155   :  { %v177_v48 = vmax.f32 %v176_v47, 0.0 }
 0x157   :  { %v178_v49 = vpack.c.bf16 %v177_v48, %v177_v48 }
 0x159   :  { %434 = vmatmul.mubr.msk.bf16.vlgmr.msra.gmra.mrb[0].mxu1 %vm138_vm2, %v178_v49 }
 0x22c   :  { %v248_v54 = vpop.f32.mrb[0].mxu1 }
 0x22d   :  { %v254_v55 = vsel %vm138_vm2, %v248_v54, 0.0  ;;  %v261_v56 = vmul.f32 %v248_v54, %v248_v54  ;;  %v435_v57 = vpop.f32.mrb[1].mxu1 }
 0x22e   :  { %v255_v58 = vrot.slane %v254_v55, 4  ;;  %v251_v59 = vpop.f32.mrb[2].mxu1 }
 0x22f   :  { %v262_v60 = vsel %vm138_vm2, %v261_v56, 0.0  ;;  %v436_v61 = vpop.f32.mrb[3].mxu1 }
 0x230   :  { %v256_v62 = vadd.f32 %v255_v58, %v254_v55  ;;  %v263_v63 = vrot.slane %v262_v60, 4 }
 0x232   :  { %v257_v1 = vrot.slane %v256_v62, 2  ;;  %v264_v2 = vadd.f32 %v263_v63, %v262_v60 }
 0x234   :  { %v258_v3 = vadd.f32 %v257_v1, %v256_v62  ;;  %v265_v4 = vrot.slane %v264_v2, 2 }
 0x236   :  { %v259_v5 = vrot.slane %v258_v3, 1  ;;  %v266_v0 = vadd.f32 %v265_v4, %v264_v2 }
 0x238   :  { %v260_v6 = vadd.f32 %v259_v5, %v258_v3  ;;  %v267_v7 = vrot.slane %v266_v0, 1 }
 0x23a   :  { %v268_v8 = vadd.f32 %v267_v7, %v266_v0  ;;  %v269_v9 = vmul.f32 0.125, %v260_v6 }
 0x23c   :  { %v270_v10 = vmul.f32 0.125, %v268_v8  ;;  %v271_v11 = vmul.f32 %v269_v9, %v269_v9 }
 0x23e   :  { %v272_v12 = vsub.f32 %v270_v10, %v271_v11 }
 0x240   :  { %v273_v13 = vmax.f32 %v272_v12, 0.0 }
 0x242   :  { %v274_v14 = vadd.f32 1e-05, %v273_v13 }
 0x244   :  { %470 = vrsqrt.f32 %v274_v14 }
 0x24e   :  { %v471_v15 = vpop.eup %470 }
 0x24f   :  { %v276_v16 = vmul.f32 %v471_v15, %v703_v36 }
 0x251   :  { %v277_v18 = vmul.f32 %v276_v16, %v269_v9  ;;  %v285_v20 = vrot.slane %v276_v16, %v284_v17 }
 0x253   :  { %v279_v19 = vrot.slane %v277_v18, 7  ;;  %v286_v23 = vmul.f32 %v285_v20, %v248_v54 }
 0x255   :  { %v281_v22 = vsub.f32 %v703_v36, %v279_v19 }
 0x257   :  { %v290_v24 = vrot.slane %v281_v22, %v289_v21 }
 0x259   :  { %v291_v25 = vadd.f32 %v290_v24, %v286_v23 }
 0x25b   :  { %v292_v26 = vmax.f32 %v291_v25, 0.0 }
 0x25d   :  { %v293_v27 = vpack.c.bf16 %v292_v26, %v292_v26 }
 0x25f   :  { %446 = vmatmul.mubr.msk.bf16.vlgmr.msra.gmra.mrb[4].mxu0 %vm138_vm2, %v293_v27 }
 0x332   :  { %v367_v30 = vpop.f32.mrb[4].mxu0 }
 0x333   :  { %v368_v31 = vadd.f32 %v367_v30, %v305_v29  ;;  %v447_v32 = vpop.f32.mrb[5].mxu0 }
 0x334   :  { %v370_v33 = vpop.f32.mrb[6].mxu0 }
 0x335   :  { %373 = vst [vmem:[#allocation10] sm:$0xff] %v368_v31  ;;  %v448_v34 = vpop.f32.mrb[7].mxu0 }
 0x336   :  { %571 = shalt.err (!%p568_p8)
}
 0x337   :  { %s572_s19 = scalar_lea.hbm %s739_s5, 128 }
 0x338   :  { %p573_p9 = scmp.ne.s32.totalorder %s739_s5, %s572_s19  ;;  %p576_p10 = scmp.lt.u32.totalorder %s572_s19, %s739_s5 }
 0x33a   :  { %p578_p11 = pnand %p576_p10, %p573_p9 }
 0x33c   :  { %581 = shalt.err (!%p578_p11)
}
 0x33d   :  { %383 = dma.vmem_to_hbm [thread:$0]  %s381_s29, 128, %s739_s5, [#allocation4]  }
 0x33e   :  { %588 = dma.done.wait [#allocation4], 128  }
 0x33f   :  { %589 = vsyncadd [#allocation4], 4294967168 }
 0x340   :  { %387 = vsyncpa [#allocation3], 1 }
 0x341   :  { %388 = vsyncpa [#allocation6], 1 }
 0x342   :  { %389 = vsyncpa [#allocation9], 1 }
 0x343   :  { %390 = vsyncpa [#allocation4], 1 }

</bundles_post_ra>
